<compile_context>
chip_gen: v6e
topology: v6e:2x2x1
jax: 0.10.0
libtpu: 0.0.40
codegen_flags: <defaults>
</compile_context>

<pallas_src>
import jax
import jax.numpy as jnp
from jax.experimental import pallas as pl
from jax.experimental.pallas import tpu as pltpu


def _gelu(x):
    # TODO(synk): PyTorch nn.GELU default is the exact erf formulation; the
    # tanh approximation is used here for guaranteed Mosaic lowering.
    return jax.nn.gelu(x, approximate=True)


def gmlp_stack_kernel(
    x_ref,       # (BB, S, D)  input activations (consumed only at layer 0)
    g1_ref,      # (1, D)      LayerNorm(d_model) gamma
    b1_ref,      # (1, D)      LayerNorm(d_model) beta
    w1_ref,      # (2, D, F)   channel proj 1, [0]=u half, [1]=v half  (bf16)
    bb1_ref,     # (2, 1, F)   channel proj 1 bias halves
    g2_ref,      # (1, F)      SGU LayerNorm(d_ffn) gamma
    b2_ref,      # (1, F)      SGU LayerNorm(d_ffn) beta
    ws_ref,      # (S, S)      spatial proj weight                     (bf16)
    bs_ref,      # (S, 1)      spatial proj bias
    w2_ref,      # (F, D)      channel proj 2                          (bf16)
    bb2_ref,     # (1, D)
    o_ref,       # (BB, S, D)  resident activation, carried across layers
    vn2_s,       # (S, BB*F)   bf16 scratch: lane-dense SGU matmul RHS
    gated_s,     # (BB*S, F)   bf16 scratch: gated activations for proj 2
):
    eps = 1e-5
    BB, S, D = o_ref.shape
    F = w1_ref.shape[2]

    # Layer 0: seed the resident activation block from the input.
    @pl.when(pl.program_id(1) == 0)
    def _():
        o_ref[...] = x_ref[...]

    x = o_ref[...].astype(jnp.float32).reshape(BB * S, D)

    # --- LayerNorm over d_model (two-pass, centered statistics) ---
    mu = jnp.mean(x, axis=-1, keepdims=True)
    xc = x - mu
    var = jnp.mean(xc * xc, axis=-1, keepdims=True)
    xn = xc * jax.lax.rsqrt(var + eps)
    xn_b = (xn * g1_ref[...] + b1_ref[...]).astype(jnp.bfloat16)

    # --- v half first: channel proj 1 (v) + GELU + LayerNorm over d_ffn ---
    v = jnp.dot(xn_b, w1_ref[1], preferred_element_type=jnp.float32)
    v = _gelu(v + bb1_ref[1])                                   # (BB*S, F)

    mu2 = jnp.mean(v, axis=-1, keepdims=True)
    vc = v - mu2
    var2 = jnp.mean(vc * vc, axis=-1, keepdims=True)
    vn = (vc * jax.lax.rsqrt(var2 + eps)) * g2_ref[...] + b2_ref[...]

    # --- Spatial Gating Unit as ONE (S,S) x (S, BB*F) matmul ---
    # Repack the b-major (BB*S, F) rows into a lane-dense (S, BB*F) slab via
    # tile-aligned slice copies (S % 8 == 0, F % 128 == 0), then a single dot.
    vn_b = vn.astype(jnp.bfloat16)
    for b in range(BB):
        vn2_s[:, b * F:(b + 1) * F] = vn_b[b * S:(b + 1) * S, :]
    vg = jnp.dot(ws_ref[...], vn2_s[...], preferred_element_type=jnp.float32)
    vg = vg + bs_ref[...]                                       # (S, BB*F)+(S,1)

    # --- u half computed late to keep its (BB*S, F) f32 live range short ---
    u = jnp.dot(xn_b, w1_ref[0], preferred_element_type=jnp.float32)
    u = _gelu(u + bb1_ref[0])                                   # (BB*S, F)

    for b in range(BB):
        gated_s[b * S:(b + 1) * S, :] = (
            u[b * S:(b + 1) * S, :] * vg[:, b * F:(b + 1) * F]
        ).astype(jnp.bfloat16)

    # --- channel projection 2 + residual ---
    y = jnp.dot(gated_s[...], w2_ref[...], preferred_element_type=jnp.float32)
    y = y + bb2_ref[...]                                        # (BB*S, D)

    o_ref[...] = (x + y).reshape(BB, S, D).astype(o_ref.dtype)


def _tpu_budget():
    """Generation-aware (vmem_limit_bytes, target_rows, weight_bufs, want_two_steps)."""
    try:
        cap = int(pltpu.get_tpu_info().vmem_capacity_bytes)
    except Exception:
        cap = None
    if cap is None:
        cap = 64 * 1024 * 1024                       # assume smallest (v7x-sized) VMEM
    if cap >= 96 * 1024 * 1024:
        # v5e / v6e: 128 MiB physical VMEM, single TensorCore.  Big tiles hide
        # the ~6*D*F-byte per-layer weight DMA; spare VMEM buys prefetch depth.
        return min(int(cap * 0.80), 104 * 1024 * 1024), 512, 3, False
    # v7x: 64 MiB physical VMEM, ~3.2 TB/s HBM hides the weight DMA already at
    # ~256-384 rows; 2 TensorCores want >= 2 "parallel" batch grid steps.
    return min(int(cap * 0.85), 56 * 1024 * 1024), 256, None, True


def _pick_block_batch(batch, seq_len, target_rows, want_two_steps):
    """Pack batch elements per grid step so BB*S ~= target_rows."""
    bb = max(1, min(batch, target_rows // max(seq_len, 1)))
    if want_two_steps and batch >= 2 and batch // bb < 2:
        # Keep >= 2 grid steps on the "parallel" batch axis so both v7x
        # TensorCores get work (single-TC chips skip this).
        bb = max(1, batch // 2)
    return bb


def _spec(block_shape, index_map, buffers=None):
    """BlockSpec with optional deeper pipelining; falls back to the default."""
    if buffers is not None and hasattr(pl, "Buffered"):
        try:
            return pl.BlockSpec(block_shape, index_map,
                                pipeline_mode=pl.Buffered(buffers))
        except TypeError:
            pass
    return pl.BlockSpec(block_shape, index_map)


def gmlp_forward(x, params, *, block_batch=None):
    """Apply the full gMLP stack.  x: (B, S, D) float32."""
    B, S, D = x.shape
    L = params["w1"].shape[0]
    F = params["w1"].shape[-1]
    assert S % 8 == 0, "seq_len must be a multiple of 8"
    assert D % 128 == 0 and F % 128 == 0, "d_model / d_ffn must be multiples of 128"

    vmem_limit, target_rows, wbufs, want_two = _tpu_budget()
    BB = (block_batch if block_batch is not None
          else _pick_block_batch(B, S, target_rows, want_two))
    grid_b = -(-B // BB)
    Bp = grid_b * BB
    xp = jnp.pad(x, ((0, Bp - B), (0, 0), (0, 0))) if Bp != B else x

    names = ("g1", "b1", "w1", "bb1", "g2", "b2", "ws", "bs", "w2", "bb2")
    big = ("w1", "w2")   # deep-buffer only the large per-layer weights

    def build(weight_bufs):
        in_specs = [pl.BlockSpec((BB, S, D), lambda b, l: (b, 0, 0))]
        for name in names:
            p = params[name]
            idx = lambda b, l, _nd=p.ndim: (l,) + (0,) * (_nd - 1)
            in_specs.append(_spec((None,) + p.shape[1:], idx,
                                  weight_bufs if name in big else None))
        return pl.pallas_call(
            gmlp_stack_kernel,
            out_shape=jax.ShapeDtypeStruct((Bp, S, D), x.dtype),
            grid=(grid_b, L),
            in_specs=in_specs,
            out_specs=pl.BlockSpec((BB, S, D), lambda b, l: (b, 0, 0)),
            scratch_shapes=[pltpu.VMEM((S, BB * F), jnp.bfloat16),
                            pltpu.VMEM((BB * S, F), jnp.bfloat16)],
            compiler_params=pltpu.CompilerParams(
                dimension_semantics=("parallel", "arbitrary"),
                vmem_limit_bytes=vmem_limit,
            ),
        )

    args = (xp,) + tuple(params[n] for n in names)
    try:
        out = build(wbufs)(*args)
    except Exception:
        if wbufs is None:
            raise
        out = build(None)(*args)   # retry with default double buffering
    return out[:B] if Bp != B else out


def init_gmlp_params(key, d_model, d_ffn, seq_len, num_layers):
    """Deterministic synthetic parameters, stacked over layers as (L, ...)."""
    k1, k2, k3 = jax.random.split(key, 3)
    w1 = (jax.random.normal(k1, (num_layers, d_model, 2 * d_ffn), jnp.float32)
          * (d_model ** -0.5))
    # u / v halves stacked -> one per-layer weight DMA descriptor.
    w1 = jnp.stack([w1[:, :, :d_ffn], w1[:, :, d_ffn:]], axis=1).astype(jnp.bfloat16)
    return {
        # LayerNorm(d_model)
        "g1": jnp.ones((num_layers, 1, d_model), jnp.float32),
        "b1": jnp.zeros((num_layers, 1, d_model), jnp.float32),
        # channel proj 1: Linear(d_model, 2*d_ffn), (in,out) layout, bf16
        "w1": w1,                                            # (L, 2, D, F)
        "bb1": jnp.zeros((num_layers, 2, 1, d_ffn), jnp.float32),
        # SGU LayerNorm(d_ffn)
        "g2": jnp.ones((num_layers, 1, d_ffn), jnp.float32),
        "b2": jnp.zeros((num_layers, 1, d_ffn), jnp.float32),
        # SGU spatial proj: Linear(seq_len, seq_len), near-zero weight, bias=1
        "ws": (jax.random.normal(k2, (num_layers, seq_len, seq_len), jnp.float32)
               * 1e-3).astype(jnp.bfloat16),
        "bs": jnp.ones((num_layers, seq_len, 1), jnp.float32),
        # channel proj 2: Linear(d_ffn, d_model), (in,out) layout, bf16
        "w2": (jax.random.normal(k3, (num_layers, d_ffn, d_model), jnp.float32)
               * (d_ffn ** -0.5)).astype(jnp.bfloat16),
        "bb2": jnp.zeros((num_layers, 1, d_model), jnp.float32),
    }


def gmlp_reference(x, params):
    """Pure-JAX f32 reference (same approximate GELU, weights upcast to f32)."""
    eps = 1e-5
    L = params["w1"].shape[0]

    def ln(t, g, b):
        mu = jnp.mean(t, -1, keepdims=True)
        var = jnp.mean((t - mu) ** 2, -1, keepdims=True)
        return (t - mu) / jnp.sqrt(var + eps) * g + b

    for l in range(L):
        res = x
        h = ln(x, params["g1"][l], params["b1"][l])
        u = _gelu(h @ params["w1"][l, 0].astype(jnp.float32) + params["bb1"][l, 0])
        v = _gelu(h @ params["w1"][l, 1].astype(jnp.float32) + params["bb1"][l, 1])
        v = ln(v, params["g2"][l], params["b2"][l])
        v = jnp.einsum("ij,bjf->bif", params["ws"][l].astype(jnp.float32), v)
        v = v + params["bs"][l][None]
        x = (u * v) @ params["w2"][l].astype(jnp.float32) + params["bb2"][l] + res
    return x


if __name__ == "__main__":
    # Small but lane-aligned shapes (D, F multiples of 128; S multiple of 8).
    batch, seq_len, d_model, d_ffn, num_layers = 2, 8, 128, 256, 2

    key = jax.random.PRNGKey(0)
    kx, kp = jax.random.split(key)
    x = jax.random.normal(kx, (batch, seq_len, d_model), jnp.float32)
    params = init_gmlp_params(kp, d_model, d_ffn, seq_len, num_layers)

    out = gmlp_forward(x, params)
    out = jax.block_until_ready(out)

    assert out.shape == (batch, seq_len, d_model)
    assert bool(jnp.all(jnp.isfinite(out)))

    # Loose check vs. f32 reference (kernel feeds the MXU in bf16).
    ref = gmlp_reference(x, params)
    max_err = float(jnp.max(jnp.abs(out - ref)))
    assert max_err < 1e-1, f"max abs err {max_err}"

    print("KERNEL_OK")
</pallas_src>

<mosaic_0001>
module attributes {stable_mosaic.version = 11 : i64} {
  func.func @gmlp_stack_kernel(%arg0: i32, %arg1: i32, %arg2: memref<1x8x128xf32, #tpu.memory_space<vmem>>, %arg3: memref<1x1x128xf32, #tpu.memory_space<vmem>>, %arg4: memref<1x1x128xf32, #tpu.memory_space<vmem>>, %arg5: memref<1x2x128x256xbf16, #tpu.memory_space<vmem>>, %arg6: memref<1x2x1x256xf32, #tpu.memory_space<vmem>>, %arg7: memref<1x1x256xf32, #tpu.memory_space<vmem>>, %arg8: memref<1x1x256xf32, #tpu.memory_space<vmem>>, %arg9: memref<1x8x8xbf16, #tpu.memory_space<vmem>>, %arg10: memref<1x8x1xf32, #tpu.memory_space<vmem>>, %arg11: memref<1x256x128xbf16, #tpu.memory_space<vmem>>, %arg12: memref<1x1x128xf32, #tpu.memory_space<vmem>>, %arg13: memref<1x8x128xf32, #tpu.memory_space<vmem>>, %arg14: memref<8x256xbf16, #tpu.memory_space<vmem>>, %arg15: memref<8x256xbf16, #tpu.memory_space<vmem>>) attributes {dimension_semantics = [#tpu.dimension_semantics<parallel>, #tpu.dimension_semantics<arbitrary>], iteration_bounds = array<i64: 2, 2>, scalar_prefetch = 0 : i64, scratch_operands = 2 : i64, tpu.core_type = #tpu.core_type<tc>, window_params = [{transform_indices = @transform_0, window_bounds = array<i64: 1, 8, 128>}, {transform_indices = @transform_1, window_bounds = array<i64: 1, 1, 128>}, {transform_indices = @transform_2, window_bounds = array<i64: 1, 1, 128>}, {transform_indices = @transform_3, window_bounds = array<i64: 1, 2, 128, 256>}, {transform_indices = @transform_4, window_bounds = array<i64: 1, 2, 1, 256>}, {transform_indices = @transform_5, window_bounds = array<i64: 1, 1, 256>}, {transform_indices = @transform_6, window_bounds = array<i64: 1, 1, 256>}, {transform_indices = @transform_7, window_bounds = array<i64: 1, 8, 8>}, {transform_indices = @transform_8, window_bounds = array<i64: 1, 8, 1>}, {transform_indices = @transform_9, window_bounds = array<i64: 1, 256, 128>}, {transform_indices = @transform_10, window_bounds = array<i64: 1, 1, 128>}, {transform_indices = @transform_11, window_bounds = array<i64: 1, 8, 128>}]} {
    %c0_i32 = arith.constant 0 : i32
    %0 = arith.cmpi eq, %arg1, %c0_i32 : i32
    %1 = arith.extui %0 : i1 to i32
    %c0_i32_0 = arith.constant 0 : i32
    %2 = arith.cmpi ne, %1, %c0_i32_0 : i32
    scf.if %2 {
      %c0_74 = arith.constant 0 : index
      %c0_75 = arith.constant 0 : index
      %c0_76 = arith.constant 0 : index
      %118 = vector.load %arg2[%c0_74, %c0_75, %c0_76] : memref<1x8x128xf32, #tpu.memory_space<vmem>>, vector<1x8x128xf32>
      %c0_77 = arith.constant 0 : index
      %c0_78 = arith.constant 0 : index
      %c0_79 = arith.constant 0 : index
      %119 = vector.load %arg13[%c0_77, %c0_78, %c0_79] : memref<1x8x128xf32, #tpu.memory_space<vmem>>, vector<1x8x128xf32>
      tpu.vector_store %arg13[%c0_77, %c0_78, %c0_79], %118 {strides = array<i32>} : memref<1x8x128xf32, #tpu.memory_space<vmem>>, vector<1x8x128xf32>,
    } else {
    }
    %c0 = arith.constant 0 : index
    %c0_1 = arith.constant 0 : index
    %c0_2 = arith.constant 0 : index
    %3 = vector.load %arg13[%c0, %c0_1, %c0_2] : memref<1x8x128xf32, #tpu.memory_space<vmem>>, vector<1x8x128xf32>
    %4 = vector.shape_cast %3 : vector<1x8x128xf32> to vector<8x128xf32>
    %cst = arith.constant dense<0.000000e+00> : vector<8xf32>
    %5 = vector.multi_reduction <add>, %4, %cst [1] : vector<8x128xf32> to vector<8xf32>
    %6 = vector.shape_cast %5 : vector<8xf32> to vector<8x1xf32>
    %cst_3 = arith.constant 1.280000e+02 : f32
    %7 = vector.broadcast %cst_3 : f32 to vector<8x1xf32>
    %8 = arith.divf %6, %7 : vector<8x1xf32>
    %9 = vector.broadcast %8 : vector<8x1xf32> to vector<8x128xf32>
    %10 = arith.subf %4, %9 : vector<8x128xf32>
    %11 = arith.mulf %10, %10 : vector<8x128xf32>
    %cst_4 = arith.constant dense<0.000000e+00> : vector<8xf32>
    %12 = vector.multi_reduction <add>, %11, %cst_4 [1] : vector<8x128xf32> to vector<8xf32>
    %13 = vector.shape_cast %12 : vector<8xf32> to vector<8x1xf32>
    %cst_5 = arith.constant 1.280000e+02 : f32
    %14 = vector.broadcast %cst_5 : f32 to vector<8x1xf32>
    %15 = arith.divf %13, %14 : vector<8x1xf32>
    %cst_6 = arith.constant 9.99999974E-6 : f32
    %16 = vector.broadcast %cst_6 : f32 to vector<8x1xf32>
    %17 = arith.addf %15, %16 : vector<8x1xf32>
    %18 = math.rsqrt %17 : vector<8x1xf32>
    %19 = vector.broadcast %18 : vector<8x1xf32> to vector<8x128xf32>
    %20 = arith.mulf %10, %19 : vector<8x128xf32>
    %c0_7 = arith.constant 0 : index
    %c0_8 = arith.constant 0 : index
    %c0_9 = arith.constant 0 : index
    %21 = vector.load %arg3[%c0_7, %c0_8, %c0_9] : memref<1x1x128xf32, #tpu.memory_space<vmem>>, vector<1x1x128xf32>
    %22 = vector.shape_cast %21 : vector<1x1x128xf32> to vector<1x128xf32>
    %23 = vector.broadcast %22 : vector<1x128xf32> to vector<8x128xf32>
    %24 = arith.mulf %20, %23 : vector<8x128xf32>
    %c0_10 = arith.constant 0 : index
    %c0_11 = arith.constant 0 : index
    %c0_12 = arith.constant 0 : index
    %25 = vector.load %arg4[%c0_10, %c0_11, %c0_12] : memref<1x1x128xf32, #tpu.memory_space<vmem>>, vector<1x1x128xf32>
    %26 = vector.shape_cast %25 : vector<1x1x128xf32> to vector<1x128xf32>
    %27 = vector.broadcast %26 : vector<1x128xf32> to vector<8x128xf32>
    %28 = arith.addf %24, %27 : vector<8x128xf32>
    %29 = arith.truncf %28 : vector<8x128xf32> to vector<8x128xbf16>
    %c0_13 = arith.constant 0 : index
    %c1 = arith.constant 1 : index
    %c0_14 = arith.constant 0 : index
    %c0_15 = arith.constant 0 : index
    %30 = vector.load %arg5[%c0_13, %c1, %c0_14, %c0_15] : memref<1x2x128x256xbf16, #tpu.memory_space<vmem>>, vector<1x1x128x256xbf16>
    %31 = vector.shape_cast %30 : vector<1x1x128x256xbf16> to vector<128x256xbf16>
    %cst_16 = arith.constant dense<0.000000e+00> : vector<8x256xf32>
    %32 = tpu.matmul %29, %31, %cst_16 {dimension_numbers = #tpu.dot_dimension_numbers<[1], [0], [0], [1], [0, 0, 1, 1], [], []>} : vector<8x128xbf16>, vector<128x256xbf16>, vector<8x256xf32> -> vector<8x256xf32>
    %c0_17 = arith.constant 0 : index
    %c1_18 = arith.constant 1 : index
    %c0_19 = arith.constant 0 : index
    %c0_20 = arith.constant 0 : index
    %33 = vector.load %arg6[%c0_17, %c1_18, %c0_19, %c0_20] : memref<1x2x1x256xf32, #tpu.memory_space<vmem>>, vector<1x1x1x256xf32>
    %34 = vector.shape_cast %33 : vector<1x1x1x256xf32> to vector<1x256xf32>
    %35 = vector.broadcast %34 : vector<1x256xf32> to vector<8x256xf32>
    %36 = arith.addf %32, %35 : vector<8x256xf32>
    %37 = arith.mulf %36, %36 : vector<8x256xf32>
    %38 = arith.mulf %36, %37 : vector<8x256xf32>
    %cst_21 = arith.constant 4.471500e-02 : f32
    %39 = vector.broadcast %cst_21 : f32 to vector<8x256xf32>
    %40 = arith.mulf %39, %38 : vector<8x256xf32>
    %41 = arith.addf %36, %40 : vector<8x256xf32>
    %cst_22 = arith.constant 0.797884583 : f32
    %42 = vector.broadcast %cst_22 : f32 to vector<8x256xf32>
    %43 = arith.mulf %42, %41 : vector<8x256xf32>
    %44 = math.tanh %43 : vector<8x256xf32>
    %cst_23 = arith.constant 1.000000e+00 : f32
    %45 = vector.broadcast %cst_23 : f32 to vector<8x256xf32>
    %46 = arith.addf %45, %44 : vector<8x256xf32>
    %cst_24 = arith.constant 5.000000e-01 : f32
    %47 = vector.broadcast %cst_24 : f32 to vector<8x256xf32>
    %48 = arith.mulf %47, %46 : vector<8x256xf32>
    %49 = arith.mulf %36, %48 : vector<8x256xf32>
    %cst_25 = arith.constant dense<0.000000e+00> : vector<8xf32>
    %50 = vector.multi_reduction <add>, %49, %cst_25 [1] : vector<8x256xf32> to vector<8xf32>
    %51 = vector.shape_cast %50 : vector<8xf32> to vector<8x1xf32>
    %cst_26 = arith.constant 2.560000e+02 : f32
    %52 = vector.broadcast %cst_26 : f32 to vector<8x1xf32>
    %53 = arith.divf %51, %52 : vector<8x1xf32>
    %54 = vector.broadcast %53 : vector<8x1xf32> to vector<8x256xf32>
    %55 = arith.subf %49, %54 : vector<8x256xf32>
    %56 = arith.mulf %55, %55 : vector<8x256xf32>
    %cst_27 = arith.constant dense<0.000000e+00> : vector<8xf32>
    %57 = vector.multi_reduction <add>, %56, %cst_27 [1] : vector<8x256xf32> to vector<8xf32>
    %58 = vector.shape_cast %57 : vector<8xf32> to vector<8x1xf32>
    %cst_28 = arith.constant 2.560000e+02 : f32
    %59 = vector.broadcast %cst_28 : f32 to vector<8x1xf32>
    %60 = arith.divf %58, %59 : vector<8x1xf32>
    %cst_29 = arith.constant 9.99999974E-6 : f32
    %61 = vector.broadcast %cst_29 : f32 to vector<8x1xf32>
    %62 = arith.addf %60, %61 : vector<8x1xf32>
    %63 = math.rsqrt %62 : vector<8x1xf32>
    %64 = vector.broadcast %63 : vector<8x1xf32> to vector<8x256xf32>
    %65 = arith.mulf %55, %64 : vector<8x256xf32>
    %c0_30 = arith.constant 0 : index
    %c0_31 = arith.constant 0 : index
    %c0_32 = arith.constant 0 : index
    %66 = vector.load %arg7[%c0_30, %c0_31, %c0_32] : memref<1x1x256xf32, #tpu.memory_space<vmem>>, vector<1x1x256xf32>
    %67 = vector.shape_cast %66 : vector<1x1x256xf32> to vector<1x256xf32>
    %68 = vector.broadcast %67 : vector<1x256xf32> to vector<8x256xf32>
    %69 = arith.mulf %65, %68 : vector<8x256xf32>
    %c0_33 = arith.constant 0 : index
    %c0_34 = arith.constant 0 : index
    %c0_35 = arith.constant 0 : index
    %70 = vector.load %arg8[%c0_33, %c0_34, %c0_35] : memref<1x1x256xf32, #tpu.memory_space<vmem>>, vector<1x1x256xf32>
    %71 = vector.shape_cast %70 : vector<1x1x256xf32> to vector<1x256xf32>
    %72 = vector.broadcast %71 : vector<1x256xf32> to vector<8x256xf32>
    %73 = arith.addf %69, %72 : vector<8x256xf32>
    %74 = arith.truncf %73 : vector<8x256xf32> to vector<8x256xbf16>
    %c0_36 = arith.constant 0 : index
    %c0_37 = arith.constant 0 : index
    %75 = vector.load %arg14[%c0_36, %c0_37] : memref<8x256xbf16, #tpu.memory_space<vmem>>, vector<8x256xbf16>
    tpu.vector_store %arg14[%c0_36, %c0_37], %74 {strides = array<i32>} : memref<8x256xbf16, #tpu.memory_space<vmem>>, vector<8x256xbf16>,
    %c0_38 = arith.constant 0 : index
    %c0_39 = arith.constant 0 : index
    %c0_40 = arith.constant 0 : index
    %76 = vector.load %arg9[%c0_38, %c0_39, %c0_40] : memref<1x8x8xbf16, #tpu.memory_space<vmem>>, vector<1x8x8xbf16>
    %77 = vector.shape_cast %76 : vector<1x8x8xbf16> to vector<8x8xbf16>
    %c0_41 = arith.constant 0 : index
    %c0_42 = arith.constant 0 : index
    %78 = vector.load %arg14[%c0_41, %c0_42] : memref<8x256xbf16, #tpu.memory_space<vmem>>, vector<8x256xbf16>
    %cst_43 = arith.constant dense<0.000000e+00> : vector<8x256xf32>
    %79 = tpu.matmul %77, %78, %cst_43 {dimension_numbers = #tpu.dot_dimension_numbers<[1], [0], [0], [1], [0, 0, 1, 1], [], []>} : vector<8x8xbf16>, vector<8x256xbf16>, vector<8x256xf32> -> vector<8x256xf32>
    %c0_44 = arith.constant 0 : index
    %c0_45 = arith.constant 0 : index
    %c0_46 = arith.constant 0 : index
    %80 = vector.load %arg10[%c0_44, %c0_45, %c0_46] : memref<1x8x1xf32, #tpu.memory_space<vmem>>, vector<1x8x1xf32>
    %81 = vector.shape_cast %80 : vector<1x8x1xf32> to vector<8x1xf32>
    %82 = vector.broadcast %81 : vector<8x1xf32> to vector<8x256xf32>
    %83 = arith.addf %79, %82 : vector<8x256xf32>
    %c0_47 = arith.constant 0 : index
    %c0_48 = arith.constant 0 : index
    %c0_49 = arith.constant 0 : index
    %c0_50 = arith.constant 0 : index
    %84 = vector.load %arg5[%c0_47, %c0_48, %c0_49, %c0_50] : memref<1x2x128x256xbf16, #tpu.memory_space<vmem>>, vector<1x1x128x256xbf16>
    %85 = vector.shape_cast %84 : vector<1x1x128x256xbf16> to vector<128x256xbf16>
    %cst_51 = arith.constant dense<0.000000e+00> : vector<8x256xf32>
    %86 = tpu.matmul %29, %85, %cst_51 {dimension_numbers = #tpu.dot_dimension_numbers<[1], [0], [0], [1], [0, 0, 1, 1], [], []>} : vector<8x128xbf16>, vector<128x256xbf16>, vector<8x256xf32> -> vector<8x256xf32>
    %c0_52 = arith.constant 0 : index
    %c0_53 = arith.constant 0 : index
    %c0_54 = arith.constant 0 : index
    %c0_55 = arith.constant 0 : index
    %87 = vector.load %arg6[%c0_52, %c0_53, %c0_54, %c0_55] : memref<1x2x1x256xf32, #tpu.memory_space<vmem>>, vector<1x1x1x256xf32>
    %88 = vector.shape_cast %87 : vector<1x1x1x256xf32> to vector<1x256xf32>
    %89 = vector.broadcast %88 : vector<1x256xf32> to vector<8x256xf32>
    %90 = arith.addf %86, %89 : vector<8x256xf32>
    %91 = arith.mulf %90, %90 : vector<8x256xf32>
    %92 = arith.mulf %90, %91 : vector<8x256xf32>
    %cst_56 = arith.constant 4.471500e-02 : f32
    %93 = vector.broadcast %cst_56 : f32 to vector<8x256xf32>
    %94 = arith.mulf %93, %92 : vector<8x256xf32>
    %95 = arith.addf %90, %94 : vector<8x256xf32>
    %cst_57 = arith.constant 0.797884583 : f32
    %96 = vector.broadcast %cst_57 : f32 to vector<8x256xf32>
    %97 = arith.mulf %96, %95 : vector<8x256xf32>
    %98 = math.tanh %97 : vector<8x256xf32>
    %cst_58 = arith.constant 1.000000e+00 : f32
    %99 = vector.broadcast %cst_58 : f32 to vector<8x256xf32>
    %100 = arith.addf %99, %98 : vector<8x256xf32>
    %cst_59 = arith.constant 5.000000e-01 : f32
    %101 = vector.broadcast %cst_59 : f32 to vector<8x256xf32>
    %102 = arith.mulf %101, %100 : vector<8x256xf32>
    %103 = arith.mulf %90, %102 : vector<8x256xf32>
    %104 = arith.mulf %103, %83 : vector<8x256xf32>
    %105 = arith.truncf %104 : vector<8x256xf32> to vector<8x256xbf16>
    %c0_60 = arith.constant 0 : index
    %c0_61 = arith.constant 0 : index
    %106 = vector.load %arg15[%c0_60, %c0_61] : memref<8x256xbf16, #tpu.memory_space<vmem>>, vector<8x256xbf16>
    tpu.vector_store %arg15[%c0_60, %c0_61], %105 {strides = array<i32>} : memref<8x256xbf16, #tpu.memory_space<vmem>>, vector<8x256xbf16>,
    %c0_62 = arith.constant 0 : index
    %c0_63 = arith.constant 0 : index
    %107 = vector.load %arg15[%c0_62, %c0_63] : memref<8x256xbf16, #tpu.memory_space<vmem>>, vector<8x256xbf16>
    %c0_64 = arith.constant 0 : index
    %c0_65 = arith.constant 0 : index
    %c0_66 = arith.constant 0 : index
    %108 = vector.load %arg11[%c0_64, %c0_65, %c0_66] : memref<1x256x128xbf16, #tpu.memory_space<vmem>>, vector<1x256x128xbf16>
    %109 = vector.shape_cast %108 : vector<1x256x128xbf16> to vector<256x128xbf16>
    %cst_67 = arith.constant dense<0.000000e+00> : vector<8x128xf32>
    %110 = tpu.matmul %107, %109, %cst_67 {dimension_numbers = #tpu.dot_dimension_numbers<[1], [0], [0], [1], [0, 0, 1, 1], [], []>} : vector<8x256xbf16>, vector<256x128xbf16>, vector<8x128xf32> -> vector<8x128xf32>
    %c0_68 = arith.constant 0 : index
    %c0_69 = arith.constant 0 : index
    %c0_70 = arith.constant 0 : index
    %111 = vector.load %arg12[%c0_68, %c0_69, %c0_70] : memref<1x1x128xf32, #tpu.memory_space<vmem>>, vector<1x1x128xf32>
    %112 = vector.shape_cast %111 : vector<1x1x128xf32> to vector<1x128xf32>
    %113 = vector.broadcast %112 : vector<1x128xf32> to vector<8x128xf32>
    %114 = arith.addf %110, %113 : vector<8x128xf32>
    %115 = arith.addf %4, %114 : vector<8x128xf32>
    %116 = vector.shape_cast %115 : vector<8x128xf32> to vector<1x8x128xf32>
    %c0_71 = arith.constant 0 : index
    %c0_72 = arith.constant 0 : index
    %c0_73 = arith.constant 0 : index
    %117 = vector.load %arg13[%c0_71, %c0_72, %c0_73] : memref<1x8x128xf32, #tpu.memory_space<vmem>>, vector<1x8x128xf32>
    tpu.vector_store %arg13[%c0_71, %c0_72, %c0_73], %116 {strides = array<i32>} : memref<1x8x128xf32, #tpu.memory_space<vmem>>, vector<1x8x128xf32>,
    return
  }
  func.func @transform_0(%arg0: i32, %arg1: i32) -> (i32, i32, i32) {
    %c0_i32 = arith.constant 0 : i32
    %c0_i32_0 = arith.constant 0 : i32
    %c0_i32_1 = arith.constant 0 : i32
    return %arg0, %c0_i32, %c0_i32_0 : i32, i32, i32
  }
  func.func @transform_1(%arg0: i32, %arg1: i32) -> (i32, i32, i32) {
    %c0_i32 = arith.constant 0 : i32
    %c0_i32_0 = arith.constant 0 : i32
    %c0_i32_1 = arith.constant 0 : i32
    return %arg1, %c0_i32, %c0_i32_0 : i32, i32, i32
  }
  func.func @transform_2(%arg0: i32, %arg1: i32) -> (i32, i32, i32) {
    %c0_i32 = arith.constant 0 : i32
    %c0_i32_0 = arith.constant 0 : i32
    %c0_i32_1 = arith.constant 0 : i32
    return %arg1, %c0_i32, %c0_i32_0 : i32, i32, i32
  }
  func.func @transform_3(%arg0: i32, %arg1: i32) -> (i32, i32, i32, i32) {
    %c0_i32 = arith.constant 0 : i32
    %c0_i32_0 = arith.constant 0 : i32
    %c0_i32_1 = arith.constant 0 : i32
    %c0_i32_2 = arith.constant 0 : i32
    return %arg1, %c0_i32, %c0_i32_0, %c0_i32_1 : i32, i32, i32, i32
  }
  func.func @transform_4(%arg0: i32, %arg1: i32) -> (i32, i32, i32, i32) {
    %c0_i32 = arith.constant 0 : i32
    %c0_i32_0 = arith.constant 0 : i32
    %c0_i32_1 = arith.constant 0 : i32
    %c0_i32_2 = arith.constant 0 : i32
    return %arg1, %c0_i32, %c0_i32_0, %c0_i32_1 : i32, i32, i32, i32
  }
  func.func @transform_5(%arg0: i32, %arg1: i32) -> (i32, i32, i32) {
    %c0_i32 = arith.constant 0 : i32
    %c0_i32_0 = arith.constant 0 : i32
    %c0_i32_1 = arith.constant 0 : i32
    return %arg1, %c0_i32, %c0_i32_0 : i32, i32, i32
  }
  func.func @transform_6(%arg0: i32, %arg1: i32) -> (i32, i32, i32) {
    %c0_i32 = arith.constant 0 : i32
    %c0_i32_0 = arith.constant 0 : i32
    %c0_i32_1 = arith.constant 0 : i32
    return %arg1, %c0_i32, %c0_i32_0 : i32, i32, i32
  }
  func.func @transform_7(%arg0: i32, %arg1: i32) -> (i32, i32, i32) {
    %c0_i32 = arith.constant 0 : i32
    %c0_i32_0 = arith.constant 0 : i32
    %c0_i32_1 = arith.constant 0 : i32
    return %arg1, %c0_i32, %c0_i32_0 : i32, i32, i32
  }
  func.func @transform_8(%arg0: i32, %arg1: i32) -> (i32, i32, i32) {
    %c0_i32 = arith.constant 0 : i32
    %c0_i32_0 = arith.constant 0 : i32
    %c0_i32_1 = arith.constant 0 : i32
    return %arg1, %c0_i32, %c0_i32_0 : i32, i32, i32
  }
  func.func @transform_9(%arg0: i32, %arg1: i32) -> (i32, i32, i32) {
    %c0_i32 = arith.constant 0 : i32
    %c0_i32_0 = arith.constant 0 : i32
    %c0_i32_1 = arith.constant 0 : i32
    return %arg1, %c0_i32, %c0_i32_0 : i32, i32, i32
  }
  func.func @transform_10(%arg0: i32, %arg1: i32) -> (i32, i32, i32) {
    %c0_i32 = arith.constant 0 : i32
    %c0_i32_0 = arith.constant 0 : i32
    %c0_i32_1 = arith.constant 0 : i32
    return %arg1, %c0_i32, %c0_i32_0 : i32, i32, i32
  }
  func.func @transform_11(%arg0: i32, %arg1: i32) -> (i32, i32, i32) {
    %c0_i32 = arith.constant 0 : i32
    %c0_i32_0 = arith.constant 0 : i32
    %c0_i32_1 = arith.constant 0 : i32
    return %arg0, %c0_i32, %c0_i32_0 : i32, i32, i32
  }
}

</mosaic_0001>

<bundles_post_ra>
// kernel: tpu_custom_call.1
= control target key start
LH: loop header
LB: loop body
LE: loop exit
PB: predicated region body
PF: predicated region fallthrough
CT: control target
= control target key end

     0   :  { %s2763_s0 = inlined_call_operand.vmem [shape: f32[2,8,128], index: 0, kind: input, shape index: {}]   ;;  %s2764_s1 = inlined_call_operand.hbm [shape: f32[2,1,128], index: 1, kind: input, shape index: {}]   ;;  %s2765_s2 = inlined_call_operand.hbm [shape: f32[2,1,128], index: 2, kind: input, shape index: {}]   ;;  %s2766_s3 = inlined_call_operand.hbm [shape: bf16[2,2,128,256], index: 3, kind: input, shape index: {}]   ;;  %s2767_s4 = inlined_call_operand.vmem [shape: f32[2,2,1,256], index: 4, kind: input, shape index: {}]   ;;  %s2768_s5 = inlined_call_operand.hbm [shape: f32[2,1,256], index: 5, kind: input, shape index: {}]   ;;  %s2769_s6 = inlined_call_operand.vmem [shape: f32[2,1,256], index: 6, kind: input, shape index: {}]   ;;  %s2770_s7 = inlined_call_operand.hbm [shape: bf16[2,8,8], index: 7, kind: input, shape index: {}]   ;;  %s2771_s8 = inlined_call_operand.vmem [shape: f32[2,8,1], index: 8, kind: input, shape index: {}]   ;;  %s2772_s9 = inlined_call_operand.hbm [shape: bf16[2,256,128], index: 9, kind: input, shape index: {}]   ;;  %s2773_s10 = inlined_call_operand.vmem [shape: f32[2,1,128], index: 10, kind: input, shape index: {}]   ;;  %s2774_s11 = inlined_call_operand.hbm [shape: f32[2,8,128], index: 11, kind: output, shape index: {}]  }
   0x1   :  { %2792 = sst [smem:[#allocation34_spill]] %s2763_s0 }
   0x2   :  { %2793 = sst [smem:[#allocation35_spill]] %s2764_s1 }
   0x3   :  { %2794 = sst [smem:[#allocation36_spill]] %s2765_s2 }
   0x4   :  { %2795 = sst [smem:[#allocation37_spill]] %s2766_s3 }
   0x5   :  { %2796 = sst [smem:[#allocation38_spill]] %s2767_s4 }
   0x6   :  { %2797 = sst [smem:[#allocation39_spill]] %s2768_s5 }
   0x7   :  { %2798 = sst [smem:[#allocation40_spill]] %s2769_s6 }
   0x8   :  { %2799 = sst [smem:[#allocation41_spill]] %s2770_s7 }
   0x9   :  { %2800 = sst [smem:[#allocation42_spill]] %s2771_s8 }
   0xa   :  { %2801 = sst [smem:[#allocation43_spill]] %s2772_s9 }
   0xb   :  { %2802 = sst [smem:[#allocation44_spill]] %s2773_s10 }
   0xc   :  { %2803 = sst [smem:[#allocation45_spill]] %s2774_s11 }
   0xd   :  { %16 = vsyncpa [#allocation5], 0 }
   0xe   :  { %18 = vsyncpa [#allocation5 + $0x1], 0 }
   0xf   :  { %19 = vsyncpa [#allocation8], 0 }
  0x10   :  { %21 = vsyncpa [#allocation8 + $0x1], 0 }
  0x11   :  { %22 = vsyncpa [#allocation11], 0 }
  0x12   :  { %24 = vsyncpa [#allocation11 + $0x1], 0 }
  0x13   :  { %25 = vsyncpa [#allocation14], 0 }
  0x14   :  { %27 = vsyncpa [#allocation14 + $0x1], 0 }
  0x15   :  { %28 = vsyncpa [#allocation6], 0 }
  0x16   :  { %30 = vsyncpa [#allocation6 + $0x1], 0  ;;  %s2341_s17 = smov 0   ;;  %s2343_s18 = smov 0  }
  0x17   :  { %s2345_s19 = smov 0   ;;  %s2347_s20 = smov 0  }
  0x18   :  { %s2349_s21 = smov 0   ;;  %s2351_s22 = smov 0  }
  0x19   :  { %s2353_s23 = smov 0   ;;  %s2355_s24 = smov 0  }
  0x1a   :  { %s2357_s25 = smov 0   ;;  %s2359_s26 = smov 0  }
  0x1b   :  { %s2361_s27 = smov 0  }
  0x1c LB: > { %2804 = sst [smem:[#allocation21_spill]] %s2227_s17  ;;  %s2395_s28 = sadd.s32 4294967295, %s2267_s27   ;;  %s2267_s27 = sphi %s2361_s27, %s36_s27   ;;  %s2263_s26 = sphi %s2359_s26, %s2855_s26   ;;  %s2259_s25 = sphi %s2357_s25, %s2854_s25   ;;  %s2255_s24 = sphi %s2355_s24, %s2853_s24   ;;  %s2251_s23 = sphi %s2353_s23, %s2852_s23   ;;  %s2247_s22 = sphi %s2351_s22, %s2851_s22   ;;  %s2243_s21 = sphi %s2349_s21, %s2850_s21   ;;  %s2239_s20 = sphi %s2347_s20, %s2849_s20   ;;  %s2235_s19 = sphi %s2345_s19, %s2848_s19   ;;  %s2231_s18 = sphi %s2343_s18, %s2857_s18   ;;  %s2227_s17 = sphi %s2341_s17, %s2856_s17  }
  0x1d   : > { %2805 = sst [smem:[#allocation22_spill]] %s2235_s19  ;;  %s1620_s29 = sadd.s32 4294967294, %s2267_s27  }
  0x1e   : > { %2806 = sst [smem:[#allocation23_spill]] %s2243_s21  ;;  %s45_s30 = sadd.s32 1, %s2259_s25 }
  0x1f   : > { %2807 = sst [smem:[#allocation24_spill]] %s2247_s22  ;;  %s48_s12 = sadd.s32 1, %s2263_s26 }
  0x20   : > { %2808 = sst [smem:[#allocation25_spill]] %s2259_s25  ;;  %p46_p0 = scmp.ge.s32.totalorder %s45_s30, 2 }
  0x21   : > { %2809 = sst [smem:[#allocation26_spill]] %s2263_s26  ;;  %s81_s13 = sadd.s32 1, %s2247_s22 }
  0x22   : > { %2810 = sst [smem:[#allocation27_spill]] %s2267_s27  ;;  %p88_p1 = scmp.ne.s32.totalorder %s2247_s22, %s2243_s21 }
  0x23   : > { %p89_p2 = scmp.eq.s32.totalorder %s2267_s27, 0  ;;  %s2859_s30 = smov (%p46_p0, %s45_s30), 0 }
  0x24   : > { %2811 = sst [smem:[#allocation28_spill]] %s2859_s30  ;;  %s2861_s12 = smov (!%p46_p0, %s48_s12), %s2263_s26 }
  0x25   : > { %s78_s14 = ssub.s32 %s2259_s25, %s2859_s30  ;;  %p2409_p3 = por %p89_p2, %p88_p1 }
  0x26   : > { %p50_p4 = scmp.ge.s32.totalorder %s2861_s12, 2  ;;  %p79_p5 = scmp.eq.s32.totalorder %s78_s14, 0 }
  0x27   : > { %p94_p6 = scmp.ne.s32.totalorder %s2243_s21, %s2239_s20  ;;  %p95_p7 = scmp.eq.s32.totalorder %s2395_s28, 0 }
  0x28   : > { %s2863_s12 = smov (%p50_p4, %s2861_s12), 0  ;;  %s341_s10 = sadd.s32 1, %s2235_s19 }
  0x29   : > { %2813 = sst [smem:[#allocation29_spill]] %s2863_s12  ;;  %p2420_p8 = por %p95_p7, %p94_p6 }
  0x2a   : > { %s2418_s16 = scalar_select %p79_p5, %s2247_s22, %s81_s13  }
  0x2b   : > { %s338_s11 = ssub.s32 %s2263_s26, %s2863_s12  ;;  %p351_p10 = scmp.ne.s32.totalorder %s2235_s19, %s2231_s18 }
  0x2c   : > { %2814 = sst [smem:[#allocation30_spill]] %s2418_s16  ;;  %p339_p9 = scmp.eq.s32.totalorder %s338_s11, 0 }
  0x2d   : > { %p352_p11 = scmp.eq.s32.totalorder %s2395_s28, 3  ;;  %p357_p13 = scmp.ne.s32.totalorder %s2231_s18, %s2227_s17 }
  0x2e   : > { %s2431_s20 = scalar_select %p339_p9, %s2235_s19, %s341_s10  }
  0x2f   : > { %p2433_p12 = por %p352_p11, %p351_p10  ;;  %p358_p0 = scmp.eq.s32.totalorder %s1620_s29, 3 }
  0x30   : > { %2816 = sst [smem:[#allocation31_spill]] %s2431_s20  ;;  %p1795_p1 = scmp.lt.s32.totalorder %s2267_s27, 4 }
  0x31   : > { %s2817_s14 = scalar_select %p2433_p12, 1, 0 }
  0x32   : > { %s2441_s13 = sand.u32 1, %s2247_s22   ;;  %p2443_p2 = por %p358_p0, %p357_p13 }
  0x33   : > { %2818 = sst [smem:[#allocation32_spill]] %s2817_s14  ;;  %s2783_s12 = sshll.u32 %s2259_s25, 4 }
  0x34   : > { %s2819_s11 = scalar_select %p2443_p2, 1, 0 }
  0x35   : > { %p2450_p4 = pnand %p1795_p1, %p2409_p3  ;;  %s2784_s26 = sand.u32 1, %s2267_s27  }
  0x36   : > { %2820 = sst [smem:[#allocation33_spill]] %s2819_s11  ;;  %s405_s22 = scalar_lea.vmem [#allocation7], %s2441_s13 }
  0x37   : > { %s2822_s2 = sld [smem:[#allocation36_spill]]  ;;  %s412_s19 = sshll.u32 %s405_s22, 4  ;;  %s413_s19 = int_to_ptr.vmem [resolvable:$true] %s412_s19 }
  0x38   : > { %p1636_p5 = scmp.ge.s32.totalorder %s2267_s27, 1  ;;  %p523_p6 = scmp.lt.s32.totalorder %s2267_s27, 5 }
  0x39   : > { %s2465_s11 = scalar_lea.sflag [#allocation8], %s2784_s26  ;;  %p2469_p3 = pneg %p2450_p4 }
  0x3a   : > { %s1980_s17 = scalar_lea.vmem %s413_s19, 16  ;;  %s2269_s16 = smov [#allocation7]  }
  0x3b   : > { %p1981_p7 = scmp.ne.s32.totalorder %s413_s19, %s1980_s17  ;;  %s1985_s20 = sshll.u32 %s2269_s16, 4  ;;  %s1986_s20 = int_to_ptr.vmem [resolvable:$false] %s1985_s20 }
  0x3c   : > { %s1987_s22 = scalar_lea.vmem %s1986_s20, 32  ;;  %p1988_p11 = scmp.lt.s32.totalorder %s413_s19, %s1986_s20 }
  0x3d   : > { %s410_s29 = scalar_lea.hbm %s2822_s2, %s2783_s12  ;;  %p1983_p9 = pnand %p1981_p7, %p2469_p3 }
  0x3e   : > { %p1989_p13 = scmp.lt.s32.totalorder %s1987_s22, %s1980_s17 }
  0x3f   : > { %p1984_p10 = pneg %p1983_p9 }
  0x40   : > { %p1990_p0 = por %p1989_p13, %p1988_p11 }
  0x42   : > { %p1991_p1 = pnand %p1990_p0, %p1984_p10 }
  0x44   : > { %1994 = shalt.err (!%p1991_p1)
}
  0x45   : > { %1778 = dma.hbm_to_vmem [thread:$0]  (!%p2450_p4), %s410_s29, 16, %s413_s19, %s2465_s11  }
  0x46   : > { %p2482_p7 = pnand %p1636_p5, %p523_p6  ;;  %s1628_s17 = sshll.u32 %s2441_s13, 1 }
  0x47   : > { %s1728_s20 = sshll.u32 %s2259_s25, 5  ;;  %s2825_s5 = sld [smem:[#allocation39_spill]] }
  0x48   : > { %s451_s2 = scalar_lea.vmem [#allocation10], %s1628_s17  ;;  %s2826_s8 = sand.u32 1, %s2267_s27  }
  0x49   : > { %s459_s14 = sshll.u32 %s451_s2, 4  ;;  %s2493_s6 = scalar_lea.sflag [#allocation11], %s2826_s8  ;;  %s460_s14 = int_to_ptr.vmem [resolvable:$true] %s459_s14 }
  0x4a   : > { %s2008_s4 = scalar_lea.vmem %s460_s14, 32  ;;  %s2270_s19 = smov [#allocation10]  }
  0x4b   : > { %p2009_p9 = scmp.ne.s32.totalorder %s460_s14, %s2008_s4  ;;  %s2013_s29 = sshll.u32 %s2270_s19, 4  ;;  %s2014_s29 = int_to_ptr.vmem [resolvable:$false] %s2013_s29 }
  0x4c   : > { %s2015_s0 = scalar_lea.vmem %s2014_s29, 64  ;;  %p2016_p6 = scmp.lt.s32.totalorder %s460_s14, %s2014_s29 }
  0x4d   : > { %s457_s26 = scalar_lea.hbm %s2825_s5, %s1728_s20  ;;  %p2011_p10 = pnand %p2009_p9, %p2469_p3 }
  0x4e   : > { %p2017_p11 = scmp.lt.s32.totalorder %s2015_s0, %s2008_s4 }
  0x4f   : > { %p2012_p5 = pneg %p2011_p10 }
  0x50   : > { %p2018_p13 = por %p2017_p11, %p2016_p6 }
  0x52   : > { %p2019_p0 = pnand %p2018_p13, %p2012_p5 }
  0x54   : > { %2022 = shalt.err (!%p2019_p0)
}
  0x55   : > { %1784 = dma.hbm_to_vmem [thread:$0]  (!%p2450_p4), %s457_s26, 32, %s460_s14, %s2493_s6  }
  0x56   : > { %s2827_s2 = sshll.u32 %s2259_s25, 4  ;;  %s2828_s1 = sld [smem:[#allocation35_spill]] }
  0x57   : > { %s388_s20 = scalar_lea.vmem [#allocation4], %s2441_s13  ;;  %s1625_s0 = sshll.u32 %s2441_s13, 8 }
  0x58   : > { %s395_s22 = sshll.u32 %s388_s20, 4  ;;  %s386_s4 = scalar_lea.sflag [#allocation5], %s2441_s13  ;;  %s396_s22 = int_to_ptr.vmem [resolvable:$true] %s395_s22 }
  0x59   : > { %s2036_s19 = scalar_lea.vmem %s396_s22, 16  ;;  %s2271_s29 = smov [#allocation4]  }
  0x5a   : > { %p2037_p1 = scmp.ne.s32.totalorder %s396_s22, %s2036_s19  ;;  %s2041_s5 = sshll.u32 %s2271_s29, 4  ;;  %s2042_s5 = int_to_ptr.vmem [resolvable:$false] %s2041_s5 }
  0x5b   : > { %s2043_s27 = scalar_lea.vmem %s2042_s5, 32  ;;  %p2044_p5 = scmp.lt.s32.totalorder %s396_s22, %s2042_s5 }
  0x5c   : > { %s393_s17 = scalar_lea.hbm %s2828_s1, %s2827_s2  ;;  %p2039_p9 = pnand %p2037_p1, %p2469_p3 }
  0x5d   : > { %p2045_p6 = scmp.lt.s32.totalorder %s2043_s27, %s2036_s19 }
  0x5e   : > { %p2040_p10 = pneg %p2039_p9 }
  0x5f   : > { %p2046_p11 = por %p2045_p6, %p2044_p5 }
  0x61   : > { %p2047_p13 = pnand %p2046_p11, %p2040_p10 }
  0x63   : > { %2050 = shalt.err (!%p2047_p13)
}
  0x64   : > { %1775 = dma.hbm_to_vmem [thread:$0]  (!%p2450_p4), %s393_s17, 16, %s396_s22, %s386_s4  }
  0x65   : > { %s1727_s26 = sshll.u32 %s2259_s25, 12  ;;  %s2829_s3 = sld [smem:[#allocation37_spill]] }
  0x66   : > { %s423_s12 = scalar_lea.vmem [#allocation9], %s1625_s0  ;;  %s1631_s29 = sshll.u32 %s2441_s13, 2 }
  0x67   : > { %s430_s20 = sshll.u32 %s423_s12, 4  ;;  %s2272_s27 = smov [#allocation9]   ;;  %s431_s20 = int_to_ptr.vmem [resolvable:$true] %s430_s20 }
  0x68   : > { %s2064_s5 = scalar_lea.vmem %s431_s20, 4096  ;;  %s2069_s19 = sshll.u32 %s2272_s27, 4  ;;  %s2070_s19 = int_to_ptr.vmem [resolvable:$false] %s2069_s19 }
  0x69   : > { %p2065_p0 = scmp.ne.s32.totalorder %s431_s20, %s2064_s5  ;;  %s2071_s1 = scalar_lea.vmem %s2070_s19, 8192 }
  0x6a   : > { %p2072_p10 = scmp.lt.s32.totalorder %s431_s20, %s2070_s19  ;;  %p2073_p5 = scmp.lt.s32.totalorder %s2071_s1, %s2064_s5 }
  0x6b   : > { %s429_s8 = scalar_lea.hbm %s2829_s3, %s1727_s26  ;;  %p2067_p1 = pnand %p2065_p0, %p2469_p3 }
  0x6c   : > { %p2074_p6 = por %p2073_p5, %p2072_p10 }
  0x6d   : > { %p2068_p9 = pneg %p2067_p1 }
  0x6f   : > { %p2075_p11 = pnand %p2074_p6, %p2068_p9 }
  0x71   : > { %2078 = shalt.err (!%p2075_p11)
}
  0x72   : > { %s2273_s17 = smov 128   ;;  %s2274_s22 = smov 8  }
  0x73   : > { %1781 = dma.hbm_to_vmem [thread:$0]  (!%p2450_p4), %s429_s8, 4096, %s431_s20, %s2465_s11, %s2273_s17, %s2273_s17, %s2274_s22  }
  0x74   : > { %s1632_s0 = sshll.u32 %s2259_s25, 6  ;;  %s2830_s7 = sld [smem:[#allocation41_spill]] }
  0x75   : > { %s477_s2 = scalar_lea.vmem [#allocation12], %s1631_s29  ;;  %s2275_s5 = smov [#allocation12]  }
  0x76   : > { %s484_s12 = sshll.u32 %s477_s2, 4  ;;  %s2097_s27 = sshll.u32 %s2275_s5, 4  ;;  %s485_s12 = int_to_ptr.vmem [resolvable:$true] %s484_s12  ;;  %s2098_s27 = int_to_ptr.vmem [resolvable:$false] %s2097_s27 }
  0x77   : > { %s2092_s1 = scalar_lea.vmem %s485_s12, 64  ;;  %s2099_s19 = scalar_lea.vmem %s2098_s27, 128 }
  0x78   : > { %p2093_p13 = scmp.ne.s32.totalorder %s485_s12, %s2092_s1  ;;  %p2100_p9 = scmp.lt.s32.totalorder %s485_s12, %s2098_s27 }
  0x79   : > { %p2101_p10 = scmp.lt.s32.totalorder %s2099_s19, %s2092_s1 }
  0x7a   : > { %s482_s14 = scalar_lea.hbm %s2830_s7, %s1632_s0  ;;  %p2095_p0 = pnand %p2093_p13, %p2469_p3 }
  0x7b   : > { %p2102_p5 = por %p2101_p10, %p2100_p9 }
  0x7c   : > { %p2096_p1 = pneg %p2095_p0 }
  0x7e   : > { %p2103_p6 = pnand %p2102_p5, %p2096_p1 }
  0x80   : > { %2106 = shalt.err (!%p2103_p6)
}
  0x81   : > { %1787 = dma.hbm_to_vmem [thread:$0]  (!%p2450_p4), %s482_s14, 64, %s485_s12, %s2493_s6  }
  0x82   : > { %s1633_s11 = sshll.u32 %s2441_s13, 7  ;;  %s1729_s8 = sshll.u32 %s2259_s25, 11 }
  0x83   : > { %s2831_s9 = sld [smem:[#allocation43_spill]]  ;;  %s502_s22 = scalar_lea.vmem [#allocation13], %s1633_s11 }
  0x84   : > { %s509_s0 = sshll.u32 %s502_s22, 4  ;;  %s499_s4 = scalar_lea.sflag [#allocation14], %s2441_s13  ;;  %s510_s0 = int_to_ptr.vmem [resolvable:$true] %s509_s0 }
  0x85   : > { %s2120_s26 = scalar_lea.vmem %s510_s0, 2048  ;;  %s2276_s2 = smov [#allocation13]  }
  0x86   : > { %p2121_p11 = scmp.ne.s32.totalorder %s510_s0, %s2120_s26  ;;  %s2125_s1 = sshll.u32 %s2276_s2, 4  ;;  %s2126_s1 = int_to_ptr.vmem [resolvable:$false] %s2125_s1 }
  0x87   : > { %s2127_s5 = scalar_lea.vmem %s2126_s1, 4096  ;;  %p2128_p1 = scmp.lt.s32.totalorder %s510_s0, %s2126_s1 }
  0x88   : > { %p2123_p13 = pnand %p2121_p11, %p2469_p3  ;;  %p2129_p9 = scmp.lt.s32.totalorder %s2127_s5, %s2120_s26 }
  0x89   : > { %s508_s17 = scalar_lea.hbm %s2831_s9, %s1729_s8 }
  0x8a   : > { %p2124_p0 = pneg %p2123_p13  ;;  %p2130_p10 = por %p2129_p9, %p2128_p1 }
  0x8c   : > { %p2131_p5 = pnand %p2130_p10, %p2124_p0 }
  0x8e   : > { %2134 = shalt.err (!%p2131_p5)
}
  0x8f   : > { %s2277_s6 = smov 64   ;;  %s2278_s14 = smov 4  }
  0x90   : > { %1790 = dma.hbm_to_vmem [thread:$0]  (!%p2450_p4), %s508_s17, 2048, %s510_s0, %s499_s4, %s2277_s6, %s2277_s6, %s2278_s14  }
  0x91   : > { %527 = sbr.rel (%p2482_p7) target bundleno = 1516 (0x5ec), region = 64  ;;  %s2544_s13 = sand.u32 (!%p2482_p7), 1, %s2243_s21  }
  0x92   : > { %s530_s15 = scalar_lea.sflag (!%p2482_p7), [#allocation5], %s2544_s13 }
  0x96   : > { %2206 = dma.done.wait (%p2420_p8), %s530_s15, 16  }
  0x97   : > { %2208 = vsyncadd (%p2420_p8), %s530_s15, 4294967280  ;;  %s537_s10 = sand.u32 1, %s2395_s28  }
  0x98   : > { %s538_s27 = scalar_lea.sflag [#allocation8], %s537_s10 }
  0x99   : > { %2210 = dma.done.wait (%p2420_p8), %s538_s27, 4112  }
  0x9a   : > { %2212 = vsyncadd (%p2420_p8), %s538_s27, 4294963184  ;;  %s1637_s19 = sshll.u32 %s2544_s13, 8  ;;  %s1638_s11 = sshll.u32 %s2544_s13, 1 }
  0x9b   : > { %s2560_s8 = scalar_lea.vmem [#allocation9], %s1637_s19  ;;  %s555_s20 = scalar_lea.sflag [#allocation11], %s537_s10 }
  0x9c   : > { %s2562_s29 = scalar_lea.vmem [#allocation10], %s1638_s11 }
  0x9d   : > { %2214 = dma.done.wait (%p2420_p8), %s555_s20, 96  }
  0x9e   : > { %2216 = vsyncadd (%p2420_p8), %s555_s20, 4294967200  ;;  %s1639_s28 = sshll.u32 %s2544_s13, 2  ;;  %s1640_s17 = sshll.u32 %s2544_s13, 7 }
  0x9f   : > { %s2570_s22 = scalar_lea.vmem [#allocation12], %s1639_s28  ;;  %s573_s0 = scalar_lea.sflag [#allocation14], %s2544_s13 }
  0xa0   : > { %s2573_s4 = scalar_lea.vmem [#allocation13], %s1640_s17 }
  0xa1   : > { %2218 = dma.done.wait (%p2420_p8), %s573_s0, 2048  }
  0xa2   : > { %2220 = vsyncadd (%p2420_p8), %s573_s0, 4294965248  ;;  %s2789_s26 = sand.u32 1, %s2231_s18   ;;  %p657_p4 = scmp.lt.s32.totalorder %s2255_s24, 1 }
  0xa3   : > { %s1641_s2 = sshll.u32 %s2789_s26, 3  ;;  %p661_p3 = scmp.lt.s32.totalorder %s2251_s23, 1 }
  0xa4   : > { %s658_s1 = scalar_select %p657_p4, %s2255_s24, 1 }
  0xa5   : > { %s2586_s5 = scalar_select %p661_p3, %s2251_s23, 1 }
  0xa6   : > { %s1642_s30 = sshll.u32 %s658_s1, 3  ;;  %s2832_s15 = sld [smem:[#allocation34_spill]] }
  0xa7   : > { %s1643_s27 = sshll.u32 %s2586_s5, 2  ;;  %s2833_s20 = sld [smem:[#allocation38_spill]] }
  0xa8   : > { %s1644_s17 = sshll.u32 %s2586_s5, 1  ;;  %s2834_s16 = sld [smem:[#allocation40_spill]] }
  0xa9   : > { %s1645_s3 = sshll.u32 %s2586_s5, 3  ;;  %s2835_s1 = sld [smem:[#allocation42_spill]] }
  0xaa   : > { %s2836_s14 = sld [smem:[#allocation44_spill]]  ;;  %s2613_s21 = scalar_lea.vmem [#allocation15], %s1641_s2 }
  0xab   : > { %p1646_p8 = scmp.ne.s32.totalorder %s2251_s23, 0 }
  0xac   : > { %s660_s10 = scalar_lea.vmem %s2832_s15, %s1642_s30 }
  0xad   : > { %s2595_s28 = scalar_lea.vmem %s2833_s20, %s1643_s27  ;;  %680 = sbr.rel (%p1646_p8) target bundleno = 180 (0xb4), region = 92 }
  0xae   : > { %s2601_s12 = scalar_lea.vmem %s2834_s16, %s1644_s17 }
  0xaf   : > { %s2607_s25 = scalar_lea.vmem %s2835_s1, %s1645_s3 }
  0xb0   : > { %s675_s15 = scalar_lea.vmem %s2836_s14, %s2586_s5 }
  0xb2   : > { %v681_v0 = vld [vmem:[%s660_s10] sm:$0xff] }
  0xb3   : > { %682 = vst [vmem:[%s2613_s21] sm:$0xff] %v681_v0 }
  0xb4 PF: > { %v1891_v2 = vld [vmem:[%s2560_s8 + $0xf4] ss:$8 sps:$4 sm:$0xff]   ;;  %v1893_v3 = vld [vmem:[%s2560_s8 + $0xf0] ss:$8 sps:$4 sm:$0xff]   ;;  %v1894_v4 = vld [vmem:[%s2560_s8 + $0xe4] ss:$8 sps:$4 sm:$0xff]   ;;  %v733_v33 = vlaneseq }
  0xb5   : > { %v1896_v5 = vld [vmem:[%s2560_s8 + $0xe0] ss:$8 sps:$4 sm:$0xff]   ;;  %823 = vmatprep.subr.bf16.mxu0 %v1891_v2  ;;  %v1897_v10 = vld [vmem:[%s2560_s8 + $0xd4] ss:$8 sps:$4 sm:$0xff]   ;;  %v1899_v11 = vld [vmem:[%s2560_s8 + $0xd0] ss:$8 sps:$4 sm:$0xff]  }
  0xb6   : > { %824 = vmatpush1.bf16.msra.mxu0 %v1893_v3  ;;  %v1900_v12 = vld [vmem:[%s2560_s8 + $0xc4] ss:$8 sps:$4 sm:$0xff]   ;;  %v1902_v13 = vld [vmem:[%s2560_s8 + $0xc0] ss:$8 sps:$4 sm:$0xff]   ;;  %v1903_v14 = vld [vmem:[%s2560_s8 + $0xb4] ss:$8 sps:$4 sm:$0xff]  }
  0xb7   : > { %825 = vmatprep.subr.bf16.mxu0 %v1894_v4  ;;  %v1905_v15 = vld [vmem:[%s2560_s8 + $0xb0] ss:$8 sps:$4 sm:$0xff]   ;;  %v1906_v16 = vld [vmem:[%s2560_s8 + $0xa4] ss:$8 sps:$4 sm:$0xff]   ;;  %v2279_v17 = vmov 0   ;;  %s2837_s3 = scalar_lea.vmem [#allocation4], %s2544_s13 }
  0xb8   : > { %855 = vmatprep.mubr.bf16.mxu0 %v2279_v17  ;;  %992 = vmatprep.mubr.bf16.mxu1 %v2279_v17  ;;  %v1908_v18 = vld [vmem:[%s2560_s8 + $0xa0] ss:$8 sps:$4 sm:$0xff]   ;;  %v1909_v19 = vld [vmem:[%s2560_s8 + $0x94] ss:$8 sps:$4 sm:$0xff]   ;;  %v1911_v20 = vld [vmem:[%s2560_s8 + $0x90] ss:$8 sps:$4 sm:$0xff]  }
  0xb9   : > { %1890 = vset.pattern.permute.xlu0 %v2279_v17  ;;  %v1912_v21 = vld [vmem:[%s2560_s8 + $0x84] ss:$8 sps:$4 sm:$0xff]   ;;  %v1914_v22 = vld [vmem:[%s2560_s8 + $0x80] ss:$8 sps:$4 sm:$0xff]   ;;  %v1647_v27 = vld [vmem:[%s2837_s3] ss:$0 sm:$0xff] }
  0xba   : > { %v2618_v1 = vld [vmem:[%s2613_s21] sm:$0xff]  ;;  %826 = vmatpush1.bf16.msra.mxu0 %v1896_v5  ;;  %s2838_s7 = scalar_lea.vmem [#allocation7], %s2544_s13  ;;  %v734_v34 = vshrl.u32 %v733_v33, 7  ;;  %v1665_v36 = vld [vmem:[%s2595_s28 + $0x2] sm:$0x3]  ;;  %vm953_vm0 = vcmask 1043456  }
  0xbb   : > { %684 = vadd.xlane.f32.xlu0 %v2618_v1  ;;  %827 = vmatprep.subr.bf16.mxu0 %v1897_v10  ;;  %v1648_v29 = vld [vmem:[%s2838_s7] ss:$0 sm:$0xff]  ;;  %vm949_vm1 = vcmask 64512   ;;  %v1915_v33 = vld [vmem:[%s2560_s8 + $0x70] ss:$8 sps:$4 sm:$0xff]   ;;  %s1378_s16 = sshll.u32 %s2613_s21, 4  ;;  %s1379_s16 = int_to_ptr.vmem [resolvable:$true] %s1378_s16 }
  0xbc   : > { %v2648_v35 = vsub.s32 0, %v734_v34  ;;  %v2651_v37 = vsub.s32 1, %v734_v34  ;;  %v1920_v34 = vld [vmem:[%s2560_s8 + $0x64] ss:$8 sps:$4 sm:$0xff]   ;;  %s2843_s2 = sand.u32 1, %s2231_s18   ;;  %s2135_s5 = scalar_lea.vmem %s1379_s16, 128 }
  0xbd   : > { %s1365_s10 = scalar_lea.sflag [#allocation6], %s2843_s2  ;;  %p2136_p7 = scmp.ne.s32.totalorder %s1379_s16, %s2135_s5 }
  0xbe   : > { %828 = vmatpush1.bf16.msra.mxu0 %v1899_v11  ;;  %v736_v38 = vrot.slane %v1665_v36, %v2648_v35  ;;  %v740_v39 = vrot.slane %v1665_v36, %v2651_v37  ;;  %v1918_v36 = vld [vmem:[%s2560_s8 + $0x60] ss:$8 sps:$4 sm:$0xff]   ;;  %s2280_s27 = smov [#allocation15]  }
  0xbf   : > { %829 = vmatprep.subr.bf16.mxu0 %v1900_v12  ;;  %p2137_p6 = pnand %p2136_p7, %p2433_p12 }
  0xc1   : > { %p2138_p11 = pneg %p2137_p6 }
  0xc2   : > { %830 = vmatpush1.bf16.msra.mxu0 %v1902_v13  ;;  %v899_v13 = vld [vmem:[%s2562_s29] sm:$0x3] }
  0xc3   : > { %831 = vmatprep.subr.bf16.mxu0 %v1903_v14  ;;  %v913_v14 = vld [vmem:[%s2601_s12] sm:$0x3]  ;;  %s1724_s12 = sshll.u32 %s2255_s24, 7  ;;  %s2139_s24 = sshll.u32 %s2280_s27, 4  ;;  %s2140_s24 = int_to_ptr.vmem [resolvable:$false] %s2139_s24 }
  0xc4   : > { %s2141_s19 = scalar_lea.vmem %s2140_s24, 256  ;;  %p2142_p13 = scmp.lt.s32.totalorder %s1379_s16, %s2140_s24 }
  0xc5   : > { %p2143_p0 = scmp.lt.s32.totalorder %s2141_s19, %s2135_s5 }
  0xc6   : > { %832 = vmatpush1.bf16.msra.mxu0 %v1905_v15  ;;  %v908_v15 = vrot.slane %v899_v13, %v2651_v37 }
  0xc7   : > { %833 = vmatprep.subr.bf16.mxu0 %v1906_v16  ;;  %v904_v16 = vrot.slane %v899_v13, %v2648_v35  ;;  %p2144_p1 = por %p2143_p0, %p2142_p13 }
  0xc9   : > { %p2145_p9 = pnand %p2144_p1, %p2138_p11 }
  0xca   : > { %834 = vmatpush1.bf16.msra.mxu0 %v1908_v18 }
  0xcb   : > { %835 = vmatprep.subr.bf16.mxu0 %v1909_v19 }
  0xce   : > { %836 = vmatpush1.bf16.msra.mxu0 %v1911_v20  ;;  %v922_v20 = vrot.slane %v913_v14, %v2651_v37 }
  0xcf   : > { %837 = vmatprep.subr.bf16.mxu0 %v1912_v21 }
  0xd2   : > { %838 = vmatpush1.bf16.msra.mxu0 %v1914_v22  ;;  %v918_v22 = vrot.slane %v913_v14, %v2648_v35 }
 0x144   : > { %v685_v6 = vpop.xlane.xlu0 %684 }
 0x145   : > { %v687_v7 = vmul.f32 0.0078125, %v685_v6 }
 0x147   : > { %v688_v8 = vsub.f32 %v2618_v1, %v687_v7 }
 0x149   : > { %v689_v9 = vmul.f32 %v688_v8, %v688_v8 }
 0x14b   : > { %690 = vadd.xlane.f32.xlu0 %v689_v9  ;;  %v938_v9 = vld [vmem:[%s2607_s25] sm:$0xff] }
 0x161   : > { %941 = vperm.xlu0 %1890, %v938_v9  }
 0x1d4   : > { %v691_v23 = vpop.xlane.xlu0 %690 }
 0x1d5   : > { %v692_v24 = vmul.f32 0.0078125, %v691_v23 }
 0x1d7   : > { %v693_v25 = vadd.f32 1e-05, %v692_v24 }
 0x1d9   : > { %1955 = vrsqrt.f32 %v693_v25 }
 0x1e6   : > { %v1956_v26 = vpop.eup %1955 }
 0x1e7   : > { %v695_v28 = vmul.f32 %v1956_v26, %v688_v8 }
 0x1e9   : > { %v703_v30 = vmul.f32 %v1647_v27, %v695_v28 }
 0x1eb   : > { %v711_v31 = vadd.f32 %v1648_v29, %v703_v30  ;;  %v1917_v29 = vld [vmem:[%s2560_s8 + $0x74] ss:$8 sps:$4 sm:$0xff]  }
 0x1ed   : > { %v2645_v32 = vpack.c.bf16 %v711_v31, %v711_v31  ;;  %v936_v31 = vld [vmem:[%s2570_s22] sm:$0xf]  ;;  %s2841_s22 = sld [smem:[#allocation45_spill]] }
 0x1ef   : > { %856 = vmatmul.mubr.bf16.vlgmr.msra.gmra.mxu0 %v2645_v32 }
 0x1f3   : > { %s1376_s26 = scalar_lea.hbm %s2841_s22, %s1724_s12 }
 0x2af   : > { %v857_v40 = vpop.f32.mrf.mxu0 }
 0x2b0   : > { %v858_v41 = vadd.f32 %v857_v40, %v736_v38  ;;  %v1923_v38 = vld [vmem:[%s2560_s8 + $0x54] ss:$8 sps:$4 sm:$0xff]   ;;  %v1926_v40 = vld [vmem:[%s2560_s8 + $0x44] ss:$8 sps:$4 sm:$0xff]  }
 0x2b1   : > { %v859_v42 = vpop.f32.mrf.mxu0 }
 0x2b2   : > { %v864_v43 = vmul.f32 %v858_v41, %v858_v41  ;;  %v860_v44 = vadd.f32 %v859_v42, %v740_v39  ;;  %v1921_v39 = vld [vmem:[%s2560_s8 + $0x50] ss:$8 sps:$4 sm:$0xff]   ;;  %v1929_v42 = vld [vmem:[%s2560_s8 + $0x34] ss:$8 sps:$4 sm:$0xff]  }
 0x2b3   : > { %v861_v45 = vpop.f32.mrf.mxu0 }
 0x2b4   : > { %v866_v46 = vmul.f32 %v864_v43, %v858_v41  ;;  %v865_v47 = vmul.f32 %v860_v44, %v860_v44  ;;  %v1927_v43 = vld [vmem:[%s2560_s8 + $0x30] ss:$8 sps:$4 sm:$0xff]   ;;  %v1935_v45 = vld [vmem:[%s2560_s8 + $0x14] ss:$8 sps:$4 sm:$0xff]  }
 0x2b5   : > { %v862_v48 = vpop.f32.mrf.mxu0 }
 0x2b6   : > { %v868_v49 = vmul.f32 0.044715, %v866_v46  ;;  %v867_v50 = vmul.f32 %v865_v47, %v860_v44  ;;  %v1933_v46 = vld [vmem:[%s2560_s8 + $0x10] ss:$8 sps:$4 sm:$0xff]   ;;  %v1938_v47 = vld [vmem:[%s2560_s8 + $0x4] ss:$8 sps:$4 sm:$0xff]  }
 0x2b7   : > { %v1936_v48 = vld [vmem:[%s2560_s8] ss:$8 sps:$4 sm:$0xff]  }
 0x2b8   : > { %v870_v51 = vadd.f32 %v868_v49, %v858_v41  ;;  %v869_v52 = vmul.f32 0.044715, %v867_v50  ;;  %v1939_v49 = vld [vmem:[%s2573_s4 + $0x78] sm:$0xff]  }
 0x2b9   : > { %v1940_v50 = vld [vmem:[%s2573_s4 + $0x38] sm:$0xff]   ;;  %1736 = vmatprep.subr.bf16.mxu0 %v1939_v49 }
 0x2ba   : > { %v871_v53 = vadd.f32 %v869_v52, %v860_v44  ;;  %v872_v54 = vmul.f32 0.7978846, %v870_v51  ;;  %1737 = vmatpush3.bf16.msra.mxu0 %v1940_v50  ;;  %v1941_v51 = vld [vmem:[%s2573_s4 + $0x70] sm:$0xff]  }
 0x2bb   : > { %v1942_v52 = vld [vmem:[%s2573_s4 + $0x30] sm:$0xff]   ;;  %1738 = vmatprep.subr.bf16.mxu0 %v1941_v51 }
 0x2bc   : > { %v873_v55 = vmul.f32 0.7978846, %v871_v53  ;;  %1957 = vtanh.f32 %v872_v54  ;;  %v1943_v53 = vld [vmem:[%s2573_s4 + $0x68] sm:$0xff]  }
 0x2bd   : > { %v1944_v54 = vld [vmem:[%s2573_s4 + $0x28] sm:$0xff]  }
 0x2be   : > { %1959 = vtanh.f32 %v873_v55  ;;  %1739 = vmatpush3.bf16.msra.mxu0 %v1942_v52  ;;  %v1946_v55 = vld [vmem:[%s2573_s4 + $0x20] sm:$0xff]  }
 0x2bf   : > { %1740 = vmatprep.subr.bf16.mxu0 %v1943_v53 }
 0x2c2   : > { %1741 = vmatpush3.bf16.msra.mxu0 %v1944_v54 }
 0x2c9   : > { %v1958_v56 = vpop.eup %1957 }
 0x2ca   : > { %v876_v57 = vadd.f32 1.0, %v1958_v56  ;;  %v1947_v56 = vld [vmem:[%s2573_s4 + $0x58] sm:$0xff]  }
 0x2cb   : > { %v1960_v58 = vpop.eup %1959 }
 0x2cc   : > { %v877_v59 = vadd.f32 1.0, %v1960_v58  ;;  %v878_v60 = vmul.f32 0.5, %v876_v57  ;;  %v1948_v57 = vld [vmem:[%s2573_s4 + $0x18] sm:$0xff]   ;;  %v1949_v58 = vld [vmem:[%s2573_s4 + $0x50] sm:$0xff]  }
 0x2ce   : > { %v879_v61 = vmul.f32 0.5, %v877_v59  ;;  %v880_v62 = vmul.f32 %v878_v60, %v858_v41  ;;  %v1924_v41 = vld [vmem:[%s2560_s8 + $0x40] ss:$8 sps:$4 sm:$0xff]   ;;  %v1951_v60 = vld [vmem:[%s2573_s4 + $0x48] sm:$0xff]  }
 0x2cf   : > { %v1950_v59 = vld [vmem:[%s2573_s4 + $0x10] sm:$0xff]  }
 0x2d0   : > { %v881_v63 = vmul.f32 %v879_v61, %v860_v44  ;;  %v1930_v44 = vld [vmem:[%s2560_s8 + $0x20] ss:$8 sps:$4 sm:$0xff]   ;;  %v1952_v61 = vld [vmem:[%s2573_s4 + $0x8] sm:$0xff]  }
 0x2d2   : > { %v882_v0 = vadd.f32 %v881_v63, %v880_v62 }
 0x2d4   : > { %883 = vadd.xlane.f32.xlu1 %v882_v0 }
 0x35d   : > { %v884_v2 = vpop.xlane.xlu1 %883 }
 0x35e   : > { %v886_v3 = vmul.f32 0.00390625, %v884_v2 }
 0x360   : > { %v887_v4 = vsub.f32 %v880_v62, %v886_v3  ;;  %v888_v5 = vsub.f32 %v881_v63, %v886_v3  ;;  %v1953_v62 = vld [vmem:[%s2573_s4 + $0x40] sm:$0xff]  }
 0x361   : > { %v1954_v63 = vld [vmem:[%s2573_s4] sm:$0xff]  }
 0x362   : > { %v889_v6 = vmul.f32 %v887_v4, %v887_v4  ;;  %v890_v7 = vmul.f32 %v888_v5, %v888_v5 }
 0x364   : > { %v891_v8 = vadd.f32 %v890_v7, %v889_v6 }
 0x366   : > { %892 = vadd.xlane.f32.xlu1 %v891_v8 }
 0x3ef   : > { %v893_v10 = vpop.xlane.xlu1 %892 }
 0x3f0   : > { %v894_v11 = vmul.f32 0.00390625, %v893_v10 }
 0x3f2   : > { %v895_v12 = vadd.f32 1e-05, %v894_v11 }
 0x3f4   : > { %1961 = vrsqrt.f32 %v895_v12 }
 0x401   : > { %v1962_v18 = vpop.eup %1961 }
 0x402   : > { %v898_v19 = vmul.f32 %v1962_v18, %v888_v5  ;;  %v897_v21 = vmul.f32 %v1962_v18, %v887_v4  ;;  %v1017_v5 = vld [vmem:[%s2595_s28] sm:$0x3] }
 0x403   : > { %v1022_v6 = vrot.slane %v1017_v5, %v2648_v35  ;;  %v1026_v7 = vrot.slane %v1017_v5, %v2651_v37 }
 0x404   : > { %v912_v23 = vmul.f32 %v908_v15, %v898_v19  ;;  %v911_v24 = vmul.f32 %v904_v16, %v897_v21 }
 0x406   : > { %v926_v25 = vadd.f32 %v922_v20, %v912_v23  ;;  %v925_v26 = vadd.f32 %v918_v22, %v911_v24 }
 0x408   : > { %v1733_v27 = vpack.c.bf16 %v926_v25, %v926_v25  ;;  %v1732_v28 = vpack.c.bf16 %v925_v26, %v925_v26  ;;  %v942_v26 = vpop.permute.xlu0 %941 }
 0x40a   : > { %1685 = vmatprep.subr.msk.bf16.mxu1 %vm953_vm0, %v1733_v27  ;;  %v955_v30 = vsel %vm953_vm0, %v1732_v28, 0 }
 0x40b   : > { %975 = vmatpush1.bf16.msra.mxu1 %v955_v30 }
 0x40c   : > { %1109 = vmatprep.subr.bf16.mxu1 %v1917_v29 }
 0x40e   : > { %1686 = vmatmul.mubr.msk.bf16.vlgmr.msra.gmra.mxu1 %vm949_vm1, %v936_v31 }
 0x40f   : > { %1110 = vmatpush1.bf16.msra.mxu1 %v1915_v33  ;;  %1141 = vmatprep.mubr.bf16.mxu1 %v2279_v17  ;;  %v1932_v17 = vld [vmem:[%s2560_s8 + $0x24] ss:$8 sps:$4 sm:$0xff]  }
 0x410   : > { %1111 = vmatprep.subr.bf16.mxu1 %v1920_v34 }
 0x413   : > { %1112 = vmatpush1.bf16.msra.mxu1 %v1918_v36 }
 0x414   : > { %1113 = vmatprep.subr.bf16.mxu1 %v1923_v38 }
 0x417   : > { %1114 = vmatpush1.bf16.msra.mxu1 %v1921_v39 }
 0x418   : > { %1115 = vmatprep.subr.bf16.mxu1 %v1926_v40 }
 0x41b   : > { %1116 = vmatpush1.bf16.msra.mxu1 %v1924_v41 }
 0x41c   : > { %1117 = vmatprep.subr.bf16.mxu1 %v1929_v42  ;;  %v1704_v42 = vld [vmem:[%s675_s15] ss:$0 sm:$0xff] }
 0x41f   : > { %1118 = vmatpush1.bf16.msra.mxu1 %v1927_v43 }
 0x420   : > { %1119 = vmatprep.subr.bf16.mxu1 %v1932_v17 }
 0x423   : > { %1120 = vmatpush1.bf16.msra.mxu1 %v1930_v44 }
 0x424   : > { %1121 = vmatprep.subr.bf16.mxu1 %v1935_v45 }
 0x427   : > { %1122 = vmatpush1.bf16.msra.mxu1 %v1933_v46 }
 0x428   : > { %1123 = vmatprep.subr.bf16.mxu1 %v1938_v47 }
 0x42b   : > { %1124 = vmatpush1.bf16.msra.mxu1 %v1936_v48 }
 0x42e   : > { %1142 = vmatmul.mubr.bf16.vlgmr.msra.gmra.mxu1 %v2645_v32  ;;  %v1945_v32 = vld [vmem:[%s2573_s4 + $0x60] sm:$0xff]   ;;  %s2842_s4 = smov %s2841_s22 }
 0x42f   : > { %1742 = vmatprep.subr.bf16.mxu0 %v1945_v32 }
 0x430   : > { %1743 = vmatpush3.bf16.msra.mxu0 %v1946_v55 }
 0x431   : > { %1744 = vmatprep.subr.bf16.mxu0 %v1947_v56 }
 0x434   : > { %1745 = vmatpush3.bf16.msra.mxu0 %v1948_v57 }
 0x435   : > { %1746 = vmatprep.subr.bf16.mxu0 %v1949_v58 }
 0x438   : > { %1747 = vmatpush3.bf16.msra.mxu0 %v1950_v59 }
 0x439   : > { %1748 = vmatprep.subr.bf16.mxu0 %v1951_v60 }
 0x43c   : > { %1749 = vmatpush3.bf16.msra.mxu0 %v1952_v61 }
 0x43d   : > { %1750 = vmatprep.subr.bf16.mxu0 %v1953_v62 }
 0x440   : > { %1751 = vmatpush3.bf16.msra.mxu0 %v1954_v63 }
 0x4ce   : > { %v994_v0 = vpop.f32.mrf.mxu1 }
 0x4cf   : > { %v995_v31 = vadd.f32 %v994_v0, %v942_v26 }
 0x4d0   : > { %v996_v2 = vpop.f32.mrf.mxu1 }
 0x4d1   : > { %v997_v33 = vadd.f32 %v996_v2, %v942_v26 }
 0x4d2   : > { %v998_v3 = vpop.f32.mrf.mxu1 }
 0x4d4   : > { %v999_v4 = vpop.f32.mrf.mxu1 }
 0x4ee   : > { %v1143_v8 = vpop.f32.mrf.mxu1 }
 0x4ef   : > { %v1144_v9 = vadd.f32 %v1143_v8, %v1022_v6 }
 0x4f0   : > { %v1145_v10 = vpop.f32.mrf.mxu1 }
 0x4f1   : > { %v1150_v11 = vmul.f32 %v1144_v9, %v1144_v9  ;;  %v1146_v12 = vadd.f32 %v1145_v10, %v1026_v7 }
 0x4f2   : > { %v1147_v13 = vpop.f32.mrf.mxu1 }
 0x4f3   : > { %v1152_v14 = vmul.f32 %v1150_v11, %v1144_v9  ;;  %v1151_v15 = vmul.f32 %v1146_v12, %v1146_v12 }
 0x4f4   : > { %v1148_v16 = vpop.f32.mrf.mxu1 }
 0x4f5   : > { %v1154_v18 = vmul.f32 0.044715, %v1152_v14  ;;  %v1153_v19 = vmul.f32 %v1151_v15, %v1146_v12 }
 0x4f7   : > { %v1156_v20 = vadd.f32 %v1154_v18, %v1144_v9  ;;  %v1155_v21 = vmul.f32 0.044715, %v1153_v19 }
 0x4f9   : > { %v1158_v22 = vmul.f32 0.7978846, %v1156_v20  ;;  %v1157_v23 = vadd.f32 %v1155_v21, %v1146_v12 }
 0x4fb   : > { %1963 = vtanh.f32 %v1158_v22  ;;  %v1159_v24 = vmul.f32 0.7978846, %v1157_v23 }
 0x4fd   : > { %1965 = vtanh.f32 %v1159_v24 }
 0x508   : > { %v1964_v35 = vpop.eup %1963 }
 0x509   : > { %v1162_v37 = vadd.f32 1.0, %v1964_v35 }
 0x50a   : > { %v1966_v25 = vpop.eup %1965 }
 0x50b   : > { %v1164_v27 = vmul.f32 0.5, %v1162_v37  ;;  %v1163_v28 = vadd.f32 1.0, %v1966_v25 }
 0x50d   : > { %v1166_v29 = vmul.f32 %v1164_v27, %v1144_v9  ;;  %v1165_v30 = vmul.f32 0.5, %v1163_v28 }
 0x50f   : > { %v1167_v34 = vmul.f32 %v1165_v30, %v1146_v12  ;;  %v1168_v36 = vmul.f32 %v1166_v29, %v995_v31 }
 0x511   : > { %v1169_v38 = vmul.f32 %v1167_v34, %v997_v33  ;;  %v1734_v40 = vpack.c.bf16 %v1168_v36, %v1168_v36 }
 0x513   : > { %v1735_v39 = vpack.c.bf16 %v1169_v38, %v1169_v38 }
 0x515   : > { %1354 = vmatprep.mubr.bf16.mxu0 %v1735_v39 }
 0x516   : > { %1355 = vmatmul.mubr.bf16.vlgmr.msra.gmra.mxu0 %v1734_v40 }
 0x5d6   : > { %v1752_v41 = vpop.f32.mrf.mxu0 }
 0x5d8   : > { %v1753_v43 = vpop.f32.mrf.mxu0 }
 0x5d9   : > { %v1754_v17 = vadd.f32 %v1753_v43, %v1752_v41 }
 0x5da   : > { %v1755_v44 = vpop.f32.mrf.mxu0 }
 0x5db   : > { %v1357_v45 = vadd.f32 %v1754_v17, %v1704_v42 }
 0x5dc   : > { %v1756_v46 = vpop.f32.mrf.mxu0 }
 0x5dd   : > { %v1362_v47 = vadd.f32 %v1357_v45, %v2618_v1 }
 0x5df   : > { %1363 = vst [vmem:[%s2613_s21] sm:$0xff] %v1362_v47 }
 0x5e0   : > { %2148 = shalt.err (!%p2145_p9)
}
 0x5e1   : > { %s2149_s11 = scalar_lea.hbm %s1376_s26, 128  ;;  %s2153_s28 = scalar_lea.hbm %s2842_s4, 256 }
 0x5e2   : > { %p2150_p10 = scmp.ne.s32.totalorder %s1376_s26, %s2149_s11  ;;  %p2154_p3 = scmp.lt.s32.totalorder %s1376_s26, %s2842_s4 }
 0x5e3   : > { %p2155_p8 = scmp.lt.s32.totalorder %s2153_s28, %s2149_s11 }
 0x5e4   : > { %p2151_p5 = pnand %p2150_p10, %p2433_p12 }
 0x5e5   : > { %p2156_p7 = por %p2155_p8, %p2154_p3 }
 0x5e6   : > { %p2152_p4 = pneg %p2151_p5 }
 0x5e8   : > { %p2157_p6 = pnand %p2156_p7, %p2152_p4 }
 0x5ea   : > { %2160 = shalt.err (!%p2157_p6)
}
 0x5eb   : > { %1770 = dma.vmem_to_hbm [thread:$0]  (%p2433_p12), %s1379_s16, 128, %s1376_s26, %s1365_s10  }
 0x5ec PF: > { %s2844_s1 = sld [smem:[#allocation27_spill]] }
 0x5ed   : > { %s2845_s6 = sld [smem:[#allocation21_spill]] }
 0x5f2   : > { %p1796_p11 = scmp.ge.s32.totalorder %s2844_s1, 2 }
 0x5f3   : > { %s1390_s14 = sand.u32 1, %s2845_s6  }
 0x5f4   : > { %p1792_p13 = pnand %p1796_p11, %p2443_p2  ;;  %s1391_s15 = scalar_lea.sflag [#allocation6], %s1390_s14 }
 0x5f6   : > { %p1793_p0 = pneg %p1792_p13 }
 0x5f8   : > { %2222 = dma.done.wait (%p1793_p0), %s1391_s15, 128  }
 0x5f9   : > { %2224 = vsyncadd (%p1793_p0), %s1391_s15, 4294967168  ;;  %s36_s27 = sadd.s32 1, %s2844_s1   ;;  %s2847_s3 = sld [smem:[#allocation22_spill]] }
 0x5fa   : > { %p33_p1 = scmp.ge.s32.totalorder %s36_s27, 6   ;;  %s2848_s19 = sld [smem:[#allocation31_spill]] }
 0x5fb   : > { %s2849_s20 = sld [smem:[#allocation23_spill]]  ;;  %s2856_s17 = smov %s2231_s18 }
 0x5fc   : > { %s2850_s21 = sld [smem:[#allocation24_spill]] }
 0x5fd   : > { %s2851_s22 = sld [smem:[#allocation30_spill]]  ;;  %35 = sbr.rel (!%p33_p1) target bundleno = 28 (0x1c), region = 191 }
 0x5fe   : > { %s2852_s23 = sld [smem:[#allocation25_spill]] }
 0x5ff   : > { %s2853_s24 = sld [smem:[#allocation26_spill]]  ;;  %s2857_s18 = smov %s2847_s3 }
 0x600   : > { %s2854_s25 = sld [smem:[#allocation28_spill]] }
 0x601   : > { %s2855_s26 = sld [smem:[#allocation29_spill]] }
 0x602   :  { %1396 = vsyncpa [#allocation5], 1 }
 0x603   :  { %1398 = vsyncpa [#allocation5 + $0x1], 1 }
 0x604   :  { %1399 = vsyncpa [#allocation8], 1 }
 0x605   :  { %1401 = vsyncpa [#allocation8 + $0x1], 1 }
 0x606   :  { %1402 = vsyncpa [#allocation11], 1 }
 0x607   :  { %1404 = vsyncpa [#allocation11 + $0x1], 1 }
 0x608   :  { %1405 = vsyncpa [#allocation14], 1 }
 0x609   :  { %1407 = vsyncpa [#allocation14 + $0x1], 1 }
 0x60a   :  { %1408 = vsyncpa [#allocation6], 1 }
 0x60b   :  { %1410 = vsyncpa [#allocation6 + $0x1], 1 }

</bundles_post_ra>
